<compile_context>
chip_gen: v6e
topology: v6e:2x2x1
jax: 0.10.0
libtpu: 0.0.40
codegen_flags: <defaults>
</compile_context>

<pallas_src>
import functools
import math

import jax
import jax.numpy as jnp
from jax.experimental import pallas as pl
from jax.experimental.pallas import tpu as pltpu

_SUBLANE = 8
_LANE = 128
_ROW_TILE_MAX = 512
_ATTN_BN_TILE = 32
_DIFF_BT_TILE = 32
_VMEM_LIMIT = 64 * 1024 * 1024


def _round_up(v, m):
    return ((v + m - 1) // m) * m


def _row_tile(m, cap=_ROW_TILE_MAX):
    # Aim for >= 2 grid steps (v7x megacore) while staying sublane aligned.
    half = _round_up(max(1, (m + 1) // 2), _SUBLANE)
    return max(_SUBLANE, min(cap, half))


def _compiler_params():
    return pltpu.CompilerParams(dimension_semantics=("parallel",),
                                vmem_limit_bytes=_VMEM_LIMIT)


# ----------------------------------------------------------------------- fused MLP

def _mlp_kernel(*refs, acts):
    """refs = (x, w1, b1, ..., wn, bn, out). Weights bf16, biases f32, f32 accum."""
    x_ref, o_ref = refs[0], refs[-1]
    h = x_ref[...]
    for li, act in enumerate(acts):
        w_ref = refs[1 + 2 * li]
        b_ref = refs[2 + 2 * li]
        kin = w_ref.shape[0]
        h = jnp.dot(h[:, :kin].astype(jnp.bfloat16), w_ref[...],
                    preferred_element_type=jnp.float32) + b_ref[...]
        if act == "relu":
            h = jnp.maximum(h, 0.0)
    o_ref[...] = h.astype(o_ref.dtype)


def pallas_mlp(x, layers, out_dtype=jnp.bfloat16):
    """layers: list of (lin_dict, act) with lin_dict = {w: (kin, kout_pad) bf16,
    b: (1, kout_pad) f32, out: natural kout}."""
    *lead, k0 = x.shape
    x2 = x.reshape(-1, k0)
    m = x2.shape[0]
    tile = _row_tile(m)
    mp = _round_up(m, tile)
    if mp != m:
        x2 = jnp.pad(x2, ((0, mp - m), (0, 0)))

    flat, acts = [], []
    in_specs = [pl.BlockSpec((tile, k0), lambda i: (i, 0))]
    for lin, act in layers:
        kin, kout_p = lin["w"].shape
        flat += [lin["w"], lin["b"]]
        acts.append(act)
        in_specs.append(pl.BlockSpec((kin, kout_p), lambda i: (0, 0)))
        in_specs.append(pl.BlockSpec((1, kout_p), lambda i: (0, 0)))

    out_p = layers[-1][0]["w"].shape[1]
    out_n = layers[-1][0]["out"]
    out = pl.pallas_call(
        functools.partial(_mlp_kernel, acts=tuple(acts)),
        out_shape=jax.ShapeDtypeStruct((mp, out_p), out_dtype),
        grid=(mp // tile,),
        in_specs=in_specs,
        out_specs=pl.BlockSpec((tile, out_p), lambda i: (i, 0)),
        compiler_params=_compiler_params(),
    )(x2, *flat)
    return out[:m, :out_n].reshape(*lead, out_n)


# -------------------------------------------------------------- fused attention block

def _attention_kernel(x_ref, wq_ref, wk_ref, wv_ref, bq_ref, bk_ref, bv_ref,
                      wo_ref, bo_ref, o_ref, *, heads, dh, t, scale):
    rows = x_ref.shape[0]
    bn = rows // t
    fp = o_ref.shape[-1]
    x = x_ref[...]                                          # (rows, F) bf16
    acc = jnp.zeros((rows, fp), jnp.float32)
    for h in range(heads):
        q = jnp.dot(x, wq_ref[h], preferred_element_type=jnp.float32) + bq_ref[h]
        k = jnp.dot(x, wk_ref[h], preferred_element_type=jnp.float32) + bk_ref[h]
        v = jnp.dot(x, wv_ref[h], preferred_element_type=jnp.float32) + bv_ref[h]
        q3 = q.reshape(bn, t, dh).astype(jnp.bfloat16)
        k3 = k.reshape(bn, t, dh).astype(jnp.bfloat16)
        v3 = v.reshape(bn, t, dh).astype(jnp.bfloat16)
        s = jnp.einsum("bqd,bkd->bqk", q3, k3,
                       preferred_element_type=jnp.float32) * scale
        s = s - jnp.max(s, axis=-1, keepdims=True)
        p = jnp.exp(s)
        p = p * pl.reciprocal(jnp.sum(p, axis=-1, keepdims=True), approx=True)
        o = jnp.einsum("bqk,bkd->bqd", p.astype(jnp.bfloat16), v3,
                       preferred_element_type=jnp.float32)
        acc = acc + jnp.dot(o.reshape(rows, dh).astype(jnp.bfloat16), wo_ref[h],
                            preferred_element_type=jnp.float32)
    o_ref[...] = (acc + bo_ref[...]).astype(o_ref.dtype)


def attention_block(x, p):
    """x: (B, T, N, F) -> (B, N, T, Fp) bf16; full bidirectional softmax over time."""
    B, T, N, F = x.shape
    H, dh = p["heads"], p["head_dim"]
    Fp = p["wo"].shape[-1]
    xr = jnp.transpose(x, (0, 2, 1, 3)).reshape(B * N * T, F).astype(jnp.bfloat16)
    bn = B * N
    bn_tile = min(_ATTN_BN_TILE, bn)
    if (bn_tile * T) % _SUBLANE != 0:
        bn_tile = bn                          # single full block (block == full dims)
    bnp = _round_up(bn, bn_tile)
    rows, rows_p = bn * T, bnp * T
    if rows_p != rows:
        xr = jnp.pad(xr, ((0, rows_p - rows), (0, 0)))
    tile = bn_tile * T

    out = pl.pallas_call(
        functools.partial(_attention_kernel, heads=H, dh=dh, t=T,
                          scale=1.0 / math.sqrt(dh)),
        out_shape=jax.ShapeDtypeStruct((rows_p, Fp), jnp.bfloat16),
        grid=(rows_p // tile,),
        in_specs=[
            pl.BlockSpec((tile, F), lambda i: (i, 0)),
            pl.BlockSpec(p["wq"].shape, lambda i: (0, 0, 0)),
            pl.BlockSpec(p["wk"].shape, lambda i: (0, 0, 0)),
            pl.BlockSpec(p["wv"].shape, lambda i: (0, 0, 0)),
            pl.BlockSpec(p["bq"].shape, lambda i: (0, 0, 0)),
            pl.BlockSpec(p["bk"].shape, lambda i: (0, 0, 0)),
            pl.BlockSpec(p["bv"].shape, lambda i: (0, 0, 0)),
            pl.BlockSpec(p["wo"].shape, lambda i: (0, 0, 0)),
            pl.BlockSpec(p["bo"].shape, lambda i: (0, 0)),
        ],
        out_specs=pl.BlockSpec((tile, Fp), lambda i: (i, 0)),
        compiler_params=_compiler_params(),
    )(xr, p["wq"], p["wk"], p["wv"], p["bq"], p["bk"], p["bv"], p["wo"], p["bo"])
    return out[:rows].reshape(B, N, T, Fp)


# -------------------------------------------------- fused LayerNorm + skip (+ accum)

def _ln_skip_kernel(*refs, eps, f, has_prev):
    if has_prev:
        x_ref, g_ref, b_ref, sw_ref, sb_ref, prev_ref, ln_ref, out_ref = refs
    else:
        x_ref, g_ref, b_ref, sw_ref, sb_ref, ln_ref, out_ref = refs
        prev_ref = None
    x = x_ref[...][:, :f].astype(jnp.float32)
    mu = jnp.mean(x, axis=-1, keepdims=True)
    xc = x - mu
    var = jnp.mean(xc * xc, axis=-1, keepdims=True)
    y = xc * jax.lax.rsqrt(var + eps) * g_ref[...] + b_ref[...]
    ln_ref[...] = y.astype(ln_ref.dtype)
    s = jnp.dot(y.astype(jnp.bfloat16), sw_ref[...],
                preferred_element_type=jnp.float32) + sb_ref[...]
    if has_prev:
        s = s + prev_ref[...]
    out_ref[...] = s.astype(out_ref.dtype)


def pallas_layernorm_skip(x, gamma, beta, skip_lin, out_prev=None, eps=1e-5):
    """Returns (LayerNorm(x[..., :f]) bf16, skip(LN) + out_prev f32)."""
    *lead, fin = x.shape
    f = gamma.shape[-1]
    ffp = skip_lin["w"].shape[1]
    x2 = x.reshape(-1, fin)
    m = x2.shape[0]
    tile = _row_tile(m)
    mp = _round_up(m, tile)
    if mp != m:
        x2 = jnp.pad(x2, ((0, mp - m), (0, 0)))

    args = [x2, gamma, beta, skip_lin["w"], skip_lin["b"]]
    in_specs = [
        pl.BlockSpec((tile, fin), lambda i: (i, 0)),
        pl.BlockSpec((1, f), lambda i: (0, 0)),
        pl.BlockSpec((1, f), lambda i: (0, 0)),
        pl.BlockSpec((f, ffp), lambda i: (0, 0)),
        pl.BlockSpec((1, ffp), lambda i: (0, 0)),
    ]
    has_prev = out_prev is not None
    if has_prev:
        prev2 = out_prev.reshape(-1, ffp)
        if mp != m:
            prev2 = jnp.pad(prev2, ((0, mp - m), (0, 0)))
        args.append(prev2)
        in_specs.append(pl.BlockSpec((tile, ffp), lambda i: (i, 0)))

    ln, out = pl.pallas_call(
        functools.partial(_ln_skip_kernel, eps=eps, f=f, has_prev=has_prev),
        out_shape=(jax.ShapeDtypeStruct((mp, f), jnp.bfloat16),
                   jax.ShapeDtypeStruct((mp, ffp), jnp.float32)),
        grid=(mp // tile,),
        in_specs=in_specs,
        out_specs=(pl.BlockSpec((tile, f), lambda i: (i, 0)),
                   pl.BlockSpec((tile, ffp), lambda i: (i, 0))),
        compiler_params=_compiler_params(),
    )(*args)
    return ln[:m].reshape(*lead, f), out[:m].reshape(*lead, ffp)


# ----------------------------------------------------------- DiffConv (+ residual)

def _diffconv_kernel(x_ref, res_ref, pf_ref, pb_ref, w_ref, b_ref, o_ref, *, k, f):
    bt, n, _ = x_ref.shape
    x = x_ref[...].astype(jnp.float32)                       # (bt, N, F)
    w = w_ref[...]                                           # ((2k+1)F, F) bf16
    pf = jnp.broadcast_to(pf_ref[...][None], (bt, n, n))     # f32 transition matrices
    pb = jnp.broadcast_to(pb_ref[...][None], (bt, n, n))

    def filt(j, h):
        wj = jnp.broadcast_to(w[j * f:(j + 1) * f][None], (bt, f, f))
        return jnp.einsum("bnf,bfo->bno", h.astype(jnp.bfloat16), wj,
                          preferred_element_type=jnp.float32)

    acc = filt(0, x)
    j = 1
    for pmat in (pf, pb):
        cur = x                                              # propagation kept in f32
        for _ in range(k):
            cur = jnp.einsum("bmn,bnf->bmf", pmat, cur,
                             preferred_element_type=jnp.float32)
            acc = acc + filt(j, cur)
            j += 1
    acc = acc + b_ref[...] + res_ref[...].astype(jnp.float32)
    o_ref[...] = acc.astype(o_ref.dtype)


def diff_conv(x_sp, res_sp, edge_index, edge_weight, space):
    """x_sp, res_sp: (B*T, N, F).  Returns (B*T, N, F) bf16 (DiffConv + residual)."""
    BT, N, F = x_sp.shape
    k = space["k"]
    src, dst = edge_index[0], edge_index[1]
    A = jnp.zeros((N, N), jnp.float32).at[dst, src].add(edge_weight)   # A[tgt, src]
    deg_in = jnp.sum(A, axis=1, keepdims=True)
    P_f = A / jnp.where(deg_in == 0, 1.0, deg_in)
    At = A.T
    deg_out = jnp.sum(At, axis=1, keepdims=True)
    P_b = At / jnp.where(deg_out == 0, 1.0, deg_out)

    bt_tile = min(_DIFF_BT_TILE, BT)
    btp = _round_up(BT, bt_tile)
    x_p, res_p = x_sp, res_sp
    if btp != BT:
        pad = ((0, btp - BT), (0, 0), (0, 0))
        x_p = jnp.pad(x_sp, pad)
        res_p = jnp.pad(res_sp, pad)

    out = pl.pallas_call(
        functools.partial(_diffconv_kernel, k=k, f=F),
        out_shape=jax.ShapeDtypeStruct((btp, N, F), jnp.bfloat16),
        grid=(btp // bt_tile,),
        in_specs=[
            pl.BlockSpec((bt_tile, N, F), lambda i: (i, 0, 0)),
            pl.BlockSpec((bt_tile, N, F), lambda i: (i, 0, 0)),
            pl.BlockSpec((N, N), lambda i: (0, 0)),
            pl.BlockSpec((N, N), lambda i: (0, 0)),
            pl.BlockSpec(((2 * k + 1) * F, F), lambda i: (0, 0)),
            pl.BlockSpec((1, F), lambda i: (0, 0)),
        ],
        out_specs=pl.BlockSpec((bt_tile, N, F), lambda i: (i, 0, 0)),
        compiler_params=_compiler_params(),
    )(x_p, res_p, P_f, P_b, space["w"], space["b"])
    return out[:BT]


# ------------------------------------------------------------------------ small glue

def edge_mlp(ew, p):
    """tsl MLP(1, 32, 1) over ~E edges: too tiny for a kernel, plain jnp."""
    h = jnp.maximum(jnp.outer(ew, p["w1"][0]) + p["b1"], 0.0)
    return (h @ p["w2"])[:, 0] + p["b2"][0]


def multi_horizon_decoder(x_last, exog, p, horizon, context_size):
    """tsl MultiHorizonMLPDecoder. x_last: (B, N, ff) (last time step of skip sum)."""
    B, N, _ = x_last.shape
    u = jnp.broadcast_to(exog, (B,) + exog.shape[1:])                  # (B, Hh, N, E)
    u_flat = jnp.transpose(u, (0, 2, 1, 3)).reshape(B, N, -1)          # (B, N, Hh*E)
    d_in = jnp.concatenate([x_last.astype(jnp.float32), u_flat], axis=-1)
    h_global = pallas_mlp(d_in, [(p["g1"], "relu"), (p["g2"], "relu"), (p["g3"], None)])
    c_global = h_global[..., :context_size]
    c_locals = h_global[..., context_size:].reshape(B, N, horizon, context_size)
    c_locals = jnp.transpose(c_locals, (0, 2, 1, 3))                   # (B, Hh, N, C)
    c_glob_b = jnp.broadcast_to(c_global[:, None], (B, horizon, N, context_size))
    x_dec = jnp.concatenate([c_glob_b, c_locals, u.astype(c_glob_b.dtype)], axis=-1)
    return pallas_mlp(x_dec, [(p["l1"], "relu"), (p["l2"], "relu"), (p["l3"], None)],
                      out_dtype=jnp.float32)


# ---------------------------------------------------------------------------- forward

def forward(params, x, edge_index, edge_weight, cfg):
    B, T, N, _ = x.shape
    x = pallas_mlp(x, [(params["enc"], None)])                         # encoder -> bf16
    out_acc = None
    for blk in params["blocks"]:
        lw = jnp.broadcast_to(blk["learnable"][None, None],
                              (B, T, N, blk["learnable"].shape[-1]))
        x = jnp.concatenate([x.astype(jnp.bfloat16), lw], axis=-1)     # LearnableWeight
        res = x
        f = x.shape[-1]
        attn = attention_block(x, blk["attn"])                         # (B, N, T, Fp)
        ln, out_acc = pallas_layernorm_skip(attn, blk["norm_g"], blk["norm_b"],
                                            blk["skip"], out_prev=out_acc)
        edge_weight = edge_mlp(edge_weight, blk["edge"])               # per-edge MLP
        x_sp = jnp.transpose(ln, (0, 2, 1, 3)).reshape(B * T, N, f)
        res_sp = res.reshape(B * T, N, f)
        x = diff_conv(x_sp, res_sp, edge_index, edge_weight,
                      blk["space"]).reshape(B, T, N, f)                # DiffConv + res
    ff = cfg["ff_size"]
    x_last = out_acc[:, :, -1, :ff]                                    # (B, N, ff)
    return multi_horizon_decoder(x_last, params["learnable_exog"], params["readout"],
                                 cfg["horizon"], cfg["context_size"])


# ------------------------------------------------------------------------------ params

def init_params(key, cfg):
    kit = iter(jax.random.split(key, 512))

    def nk():
        return next(kit)

    def raw(fi, fo):
        lim = 1.0 / math.sqrt(fi)
        w = jax.random.uniform(nk(), (fi, fo), jnp.float32, -lim, lim)
        b = jax.random.uniform(nk(), (fo,), jnp.float32, -lim, lim)
        return w, b

    def lin(fi, fo):
        w, b = raw(fi, fo)
        fop = _round_up(fo, _LANE)
        return dict(w=jnp.pad(w, ((0, 0), (0, fop - fo))).astype(jnp.bfloat16),
                    b=jnp.pad(b.reshape(1, -1), ((0, 0), (0, fop - fo))),
                    out=fo)

    hs, ff, lf = cfg["hidden_size"], cfg["ff_size"], cfg["learnable_feature_size"]
    N, Hh, E, C, k = (cfg["n_nodes"], cfg["horizon"], cfg["exog_size"],
                      cfg["context_size"], cfg["gnn_kernel"])
    H = cfg["n_heads"]

    params = dict(enc=lin(cfg["input_size"], hs), blocks=[])
    for i in range(cfg["number_of_blocks"]):
        F = hs + (i + 1) * lf
        dh = F // H
        Fp = _round_up(F, _LANE)
        w_in, b_in = raw(F, 3 * F)
        w_out, b_out = raw(F, F)

        def heads_of(w, b, F=F, H=H, dh=dh):
            return (w.reshape(F, H, dh).transpose(1, 0, 2).astype(jnp.bfloat16),
                    b.reshape(H, 1, dh))

        wq, bq = heads_of(w_in[:, :F], b_in[:F])
        wk, bk = heads_of(w_in[:, F:2 * F], b_in[F:2 * F])
        wv, bv = heads_of(w_in[:, 2 * F:], b_in[2 * F:])
        wo = jnp.pad(w_out, ((0, 0), (0, Fp - F))).reshape(H, dh, Fp).astype(jnp.bfloat16)
        bo = jnp.pad(b_out.reshape(1, -1), ((0, 0), (0, Fp - F)))

        fw, fb = raw((2 * k + 1) * F, F)
        e1w, e1b = raw(1, 32)
        e2w = jax.random.normal(nk(), (32, 1), jnp.float32) * 0.01
        e2b = jnp.ones((1,), jnp.float32)      # keep transformed edge weights positive

        params["blocks"].append(dict(
            learnable=(jax.random.normal(nk(), (N, lf), jnp.float32) * 0.1
                       ).astype(jnp.bfloat16),
            attn=dict(wq=wq, wk=wk, wv=wv, bq=bq, bk=bk, bv=bv, wo=wo, bo=bo,
                      heads=H, head_dim=dh),
            norm_g=jnp.ones((1, F), jnp.float32),
            norm_b=jnp.zeros((1, F), jnp.float32),
            skip=lin(F, ff),
            edge=dict(w1=e1w, b1=e1b, w2=e2w, b2=e2b),
            space=dict(w=fw.astype(jnp.bfloat16), b=fb.reshape(1, -1), k=k),
        ))

    params["learnable_exog"] = jax.random.normal(nk(), (1, Hh, N, E), jnp.float32) * 0.1
    dh2 = 2 * ff
    params["readout"] = dict(
        g1=lin(ff + Hh * E, dh2), g2=lin(dh2, dh2), g3=lin(dh2, C * (Hh + 1)),
        l1=lin(2 * C + E, dh2), l2=lin(dh2, dh2), l3=lin(dh2, cfg["input_size"]),
    )
    return params


# -------------------------------------------------------------------------------- main

if __name__ == "__main__":
    cfg = dict(input_size=4, n_nodes=4, horizon=3, hidden_size=32, ff_size=32,
               gnn_kernel=2, learnable_feature_size=16, number_of_blocks=2,
               n_heads=8, exog_size=32, context_size=32, seq_len=8, batch=2)

    key = jax.random.PRNGKey(0)
    kp, kx, kw = jax.random.split(key, 3)
    params = init_params(kp, cfg)

    x = jax.random.normal(kx, (cfg["batch"], cfg["seq_len"], cfg["n_nodes"],
                               cfg["input_size"]), jnp.float32)
    src = jnp.array([0, 1, 2, 3, 1, 2, 3, 0], jnp.int32)
    dst = jnp.array([1, 2, 3, 0, 0, 1, 2, 3], jnp.int32)
    edge_index = jnp.stack([src, dst])                     # [2, E], (source, target)
    edge_weight = jax.random.uniform(kw, (src.shape[0],), jnp.float32, 0.5, 1.5)

    y = forward(params, x, edge_index, edge_weight, cfg)
    y = jax.block_until_ready(y)
    assert y.shape == (cfg["batch"], cfg["horizon"], cfg["n_nodes"],
                       cfg["input_size"]), y.shape
    assert not bool(jnp.isnan(y).any())
    print("KERNEL_OK")
</pallas_src>

<mosaic_0001>
module attributes {stable_mosaic.version = 11 : i64} {
  func.func @_mlp_kernel(%arg0: i32, %arg1: memref<32x4xf32, #tpu.memory_space<vmem>>, %arg2: memref<4x128xbf16, #tpu.memory_space<vmem>>, %arg3: memref<1x128xf32, #tpu.memory_space<vmem>>, %arg4: memref<32x128xbf16, #tpu.memory_space<vmem>>) attributes {dimension_semantics = [#tpu.dimension_semantics<parallel>], iteration_bounds = array<i64: 2>, scalar_prefetch = 0 : i64, scratch_operands = 0 : i64, tpu.core_type = #tpu.core_type<tc>, window_params = [{transform_indices = @transform_0, window_bounds = array<i64: 32, 4>}, {pipeline_mode = #tpu.pipeline_mode<synchronous>, transform_indices = @transform_1, window_bounds = array<i64: 4, 128>}, {pipeline_mode = #tpu.pipeline_mode<synchronous>, transform_indices = @transform_2, window_bounds = array<i64: 1, 128>}, {transform_indices = @transform_3, window_bounds = array<i64: 32, 128>}]} {
    %c0 = arith.constant 0 : index
    %c0_0 = arith.constant 0 : index
    %0 = vector.load %arg1[%c0, %c0_0] : memref<32x4xf32, #tpu.memory_space<vmem>>, vector<32x4xf32>
    %1 = arith.truncf %0 : vector<32x4xf32> to vector<32x4xbf16>
    %c0_1 = arith.constant 0 : index
    %c0_2 = arith.constant 0 : index
    %2 = vector.load %arg2[%c0_1, %c0_2] : memref<4x128xbf16, #tpu.memory_space<vmem>>, vector<4x128xbf16>
    %cst = arith.constant dense<0.000000e+00> : vector<32x128xf32>
    %3 = tpu.matmul %1, %2, %cst {dimension_numbers = #tpu.dot_dimension_numbers<[1], [0], [0], [1], [0, 0, 1, 1], [], []>} : vector<32x4xbf16>, vector<4x128xbf16>, vector<32x128xf32> -> vector<32x128xf32>
    %c0_3 = arith.constant 0 : index
    %c0_4 = arith.constant 0 : index
    %4 = vector.load %arg3[%c0_3, %c0_4] : memref<1x128xf32, #tpu.memory_space<vmem>>, vector<1x128xf32>
    %5 = vector.broadcast %4 : vector<1x128xf32> to vector<32x128xf32>
    %6 = arith.addf %3, %5 : vector<32x128xf32>
    %7 = arith.truncf %6 : vector<32x128xf32> to vector<32x128xbf16>
    %c0_5 = arith.constant 0 : index
    %c0_6 = arith.constant 0 : index
    %8 = vector.load %arg4[%c0_5, %c0_6] : memref<32x128xbf16, #tpu.memory_space<vmem>>, vector<32x128xbf16>
    tpu.vector_store %arg4[%c0_5, %c0_6], %7 {strides = array<i32>} : memref<32x128xbf16, #tpu.memory_space<vmem>>, vector<32x128xbf16>,
    return
  }
  func.func @transform_0(%arg0: i32) -> (i32, i32) {
    %c0_i32 = arith.constant 0 : i32
    %c0_i32_0 = arith.constant 0 : i32
    return %arg0, %c0_i32 : i32, i32
  }
  func.func @transform_1(%arg0: i32) -> (i32, i32) {
    %c0_i32 = arith.constant 0 : i32
    %c0_i32_0 = arith.constant 0 : i32
    %c0_i32_1 = arith.constant 0 : i32
    return %c0_i32, %c0_i32_0 : i32, i32
  }
  func.func @transform_2(%arg0: i32) -> (i32, i32) {
    %c0_i32 = arith.constant 0 : i32
    %c0_i32_0 = arith.constant 0 : i32
    %c0_i32_1 = arith.constant 0 : i32
    return %c0_i32, %c0_i32_0 : i32, i32
  }
  func.func @transform_3(%arg0: i32) -> (i32, i32) {
    %c0_i32 = arith.constant 0 : i32
    %c0_i32_0 = arith.constant 0 : i32
    return %arg0, %c0_i32 : i32, i32
  }
}

</mosaic_0001>

<bundles_post_ra>
// kernel: tpu_custom_call.1
= control target key start
LH: loop header
LB: loop body
LE: loop exit
PB: predicated region body
PF: predicated region fallthrough
CT: control target
= control target key end

     0   :  { %8 = vsyncpa [#allocation3], 0  ;;  %s621_s0 = inlined_call_operand.vmem [shape: f32[64,4], index: 0, kind: input, shape index: {}]   ;;  %s622_s1 = inlined_call_operand.vmem [shape: bf16[4,128], index: 1, kind: input, shape index: {}]   ;;  %s623_s2 = inlined_call_operand.vmem [shape: f32[1,128], index: 2, kind: input, shape index: {}]   ;;  %s624_s3 = inlined_call_operand.hbm [shape: bf16[64,128], index: 3, kind: output, shape index: {}]  }
   0x1   :  { %10 = vsyncpa [#allocation3 + $0x1], 0  ;;  %s514_s12 = smov 0   ;;  %s516_s13 = smov 0  }
   0x2   :  { %s518_s14 = smov 0   ;;  %s520_s15 = smov 0  }
   0x3 LB: > { %s535_s16 = sadd.s32 4294967295, %s489_s15   ;;  %s343_s17 = sadd.s32 4294967294, %s489_s15   ;;  %s489_s15 = sphi %s520_s15, %s630_s15   ;;  %s485_s14 = sphi %s518_s14, %s629_s14   ;;  %s481_s13 = sphi %s516_s13, %s628_s13   ;;  %s477_s12 = sphi %s514_s12, %s627_s12  }
   0x4   : > { %s539_s18 = sadd.s32 1, %s489_s15   ;;  %s91_s19 = sadd.s32 1, %s485_s14 }
   0x5   : > { %s88_s20 = ssub.s32 %s489_s15, %s539_s18  ;;  %p101_p0 = scmp.ne.s32.totalorder %s485_s14, %s481_s13 }
   0x6   : > { %p89_p1 = scmp.eq.s32.totalorder %s88_s20, 0  ;;  %p102_p2 = scmp.eq.s32.totalorder %s535_s16, 1 }
   0x7   : > { %p107_p3 = scmp.ne.s32.totalorder %s481_s13, %s477_s12  ;;  %p108_p4 = scmp.eq.s32.totalorder %s343_s17, 1 }
   0x8   : > { %s550_s21 = scalar_select %p89_p1, %s485_s14, %s91_s19  }
   0x9   : > { %p552_p5 = por %p102_p2, %p101_p0  ;;  %p556_p6 = por %p108_p4, %p107_p3 }
   0xa   : > { %p346_p7 = scmp.ge.s32.totalorder %s489_s15, 1  ;;  %p141_p8 = scmp.lt.s32.totalorder %s489_s15, 3 }
   0xc   : > { %p142_p9 = pnand %p346_p7, %p141_p8 }
   0xd   : > { %s348_s26 = sshll.u32 (!%p142_p9), %s535_s16, 2  ;;  %s162_s4 = sand.u32 (!%p142_p9), 1, %s481_s13  }
   0xe   : > { %145 = sbr.rel (%p142_p9) target bundleno = 243 (0xf3), region = 32  ;;  %p166_p10 = scmp.lt.s32.totalorder (!%p142_p9), %s348_s26, 7 }
   0xf   : > { %s347_s5 = sshll.u32 (!%p142_p9), %s162_s4, 4  ;;  %s366_s10 = sshll.u32 (!%p142_p9), %s535_s16, 8 }
  0x10   : > { %s164_s8 = scalar_lea.vmem (!%p142_p9), [#allocation2], %s347_s5  ;;  %s579_s19 = scalar_lea.hbm (!%p142_p9), %s624_s3, %s366_s10 }
  0x11   : > { %s281_s9 = sshll.u32 (!%p142_p9), %s164_s8, 4  ;;  %s581_s20 = scalar_lea.sflag (!%p142_p9), [#allocation3], %s162_s4  ;;  %s574_s9 = int_to_ptr.vmem [resolvable:$true] %s281_s9 }
  0x12   : > { %s429_s16 = scalar_lea.vmem (!%p142_p9), %s574_s9, 256  ;;  %s491_s24 = smov (!%p142_p9), [#allocation2]  }
  0x13   : > { %v179_v0 = vld [vmem:[%s622_s1] sm:$0x3]  ;;  %vm194_vm0 = vcmask 1041408   ;;  %s632_s26 = smov (!%p166_p10, %s348_s26), 7  ;;  %vm187_vm1 = vcmask 31744   ;;  %p430_p11 = scmp.ne.s32.totalorder %s574_s9, %s429_s16 }
  0x14   : > { %387 = vmatprep.subr.msk.bf16.mxu0 %vm194_vm0, %v179_v0  ;;  %v196_v1 = vsel %vm194_vm0, %v179_v0, 0  ;;  %s349_s27 = sshll.u32 %s632_s26, 3  ;;  %v350_v9 = vld [vmem:[%s623_s2] ss:$0 sm:$0xff]  ;;  %s433_s25 = sshll.u32 %s491_s24, 4  ;;  %s434_s25 = int_to_ptr.vmem [resolvable:$false] %s433_s25 }
  0x15   : > { %382 = vmatpush3.bf16.msra.mxu0 %v196_v1  ;;  %s169_s30 = scalar_lea.vmem %s621_s0, %s349_s27  ;;  %p431_p12 = pnand %p430_p11, %p552_p5 }
  0x16   : > { %v173_v2 = vld [vmem:[%s169_s30] sm:$0xff]  ;;  %v174_v3 = vld [vmem:[%s169_s30 + $0x8] sm:$0xff]  ;;  %v175_v4 = vld [vmem:[%s169_s30 + $0x10] sm:$0xff]  ;;  %s435_s26 = scalar_lea.vmem %s434_s25, 512  ;;  %p436_p0 = scmp.lt.s32.totalorder %s574_s9, %s434_s25 }
  0x17   : > { %v177_v5 = vpack.c.bf16 %v174_v3, %v173_v2  ;;  %v176_v6 = vld [vmem:[%s169_s30 + $0x18] sm:$0xff]  ;;  %p432_p13 = pneg %p431_p12  ;;  %p437_p1 = scmp.lt.s32.totalorder %s435_s26, %s429_s16 }
  0x18   : > { %v178_v7 = vpack.c.bf16 %v176_v6, %v175_v4 }
  0x19   : > { %383 = vmatprep.mubr.msk.bf16.mxu0 %vm187_vm1, %v177_v5  ;;  %p438_p2 = por %p437_p1, %p436_p0 }
  0x1a   : > { %384 = vmatmul.mubr.msk.bf16.vlgmr.msra.gmra.mxu0 %vm187_vm1, %v178_v7 }
  0x1b   : > { %p439_p3 = pnand %p438_p2, %p432_p13 }
  0xda   : > { %v385_v8 = vpop.f32.mrf.mxu0 }
  0xdb   : > { %v241_v12 = vadd.f32 %v385_v8, %v350_v9 }
  0xdc   : > { %v232_v10 = vpop.f32.mrf.mxu0 }
  0xdd   : > { %v233_v15 = vadd.f32 %v350_v9, %v232_v10 }
  0xde   : > { %v386_v11 = vpop.f32.mrf.mxu0 }
  0xdf   : > { %v244_v13 = vadd.f32 %v386_v11, %v350_v9 }
  0xe0   : > { %v235_v14 = vpop.f32.mrf.mxu0 }
  0xe1   : > { %v375_v16 = vpack.c.bf16 %v244_v13, %v241_v12  ;;  %v236_v17 = vadd.f32 %v350_v9, %v235_v14 }
  0xe3   : > { %377 = vst [vmem:[%s164_s8 + $0x8] sm:$0xff] %v375_v16   ;;  %v370_v18 = vpack.c.bf16 %v236_v17, %v233_v15 }
  0xe5   : > { %371 = vst [vmem:[%s164_s8] sm:$0xff] %v370_v18  }
  0xe6   : > { %442 = shalt.err (!%p439_p3)
}
  0xe7   : > { %s443_s27 = scalar_lea.hbm %s579_s19, 256  ;;  %s447_s30 = scalar_lea.hbm %s624_s3, 512 }
  0xe8   : > { %p444_p4 = scmp.ne.s32.totalorder %s579_s19, %s443_s27  ;;  %p448_p9 = scmp.lt.s32.totalorder %s579_s19, %s624_s3 }
  0xe9   : > { %p449_p10 = scmp.lt.s32.totalorder %s447_s30, %s443_s27 }
  0xea   : > { %p445_p7 = pnand %p444_p4, %p552_p5 }
  0xeb   : > { %p450_p11 = por %p449_p10, %p448_p9 }
  0xec   : > { %p446_p8 = pneg %p445_p7 }
  0xee   : > { %p451_p12 = pnand %p450_p11, %p446_p8 }
  0xf0   : > { %454 = shalt.err (!%p451_p12)
}
  0xf1   : > { %s492_s6 = smov 64   ;;  %s493_s7 = smov 4  }
  0xf2   : > { %388 = dma.vmem_to_hbm [thread:$0]  (%p552_p5), %s574_s9, 256, %s579_s19, %s581_s20, %s492_s6, %s492_s6, %s493_s7  }
  0xf3 PF: > { %p394_p13 = scmp.ge.s32.totalorder %s489_s15, 2  ;;  %s296_s8 = sand.u32 1, %s477_s12  }
  0xf4   : > { %s297_s10 = scalar_lea.sflag [#allocation3], %s296_s8 }
  0xf5   : > { %p391_p0 = pnand %p394_p13, %p556_p6 }
  0xf7   : > { %p392_p1 = pneg %p391_p0 }
  0xf9   : > { %472 = dma.done.wait (%p392_p1), %s297_s10, 256  }
  0xfa   : > { %474 = vsyncadd (%p392_p1), %s297_s10, 4294967040  ;;  %p13_p2 = scmp.ge.s32.totalorder %s539_s18, 4   ;;  %s627_s12 = smov %s481_s13 }
  0xfb   : > { %s628_s13 = smov %s485_s14  ;;  %s629_s14 = smov %s550_s21 }
  0xfc   : > { %s630_s15 = smov %s539_s18  ;;  %15 = sbr.rel (!%p13_p2) target bundleno = 3 (0x3), region = 67 }
 0x101   :  { %302 = vsyncpa [#allocation3], 1 }
 0x102   :  { %304 = vsyncpa [#allocation3 + $0x1], 1 }

</bundles_post_ra>
